<compile_context>
chip_gen: v5e
topology: v5e:2x2
jax: 0.10.0
libtpu: 0.0.40
codegen_flags: <defaults>
</compile_context>

<pallas_src>
import jax
import jax.numpy as jnp
from jax.experimental import pallas as pl
from jax.experimental.pallas import tpu as pltpu

C_IN = 3
KSIZE = 5   # Conv2d(3, 1, kernel_size=5, stride=5, bias=False), weight = ones(1,3,5,5)


def _pkd_kernel(s_ref, t_ref, q_ref, l1_ref, ps_ref, pt_ref):
    s = s_ref[...].astype(jnp.float32)          # (bt, C*H*W)  lane-dense slab
    t = t_ref[...].astype(jnp.float32)

    # ---- per-block partial L1 sum (mean is finalized in the wrapper) ----
    l1_ref[0, 0] = jnp.sum(jnp.abs(s - t))

    # ---- all-ones 3->1 conv, k=5, stride=5 == channel-sum + 5x5 block-sum
    #      == one batch-independent pooling matmul per tensor (channel sum is
    #      folded into the 0/1 matrix Q), no staging copy, no concat ----
    q = q_ref[...]                              # (C*H*W, Ho*Wo), 0/1 f32
    ps_ref[...] = jnp.dot(s, q, preferred_element_type=jnp.float32)
    pt_ref[...] = jnp.dot(t, q, preferred_element_type=jnp.float32)


def _round_up(x, m):
    return ((x + m - 1) // m) * m


def _device_vmem_and_cores():
    """(physical VMEM bytes, TensorCores per chip) with safe fallbacks."""
    try:
        kind = getattr(jax.devices()[0], "device_kind", "").lower()
    except Exception:
        kind = ""
    is_v7 = "v7" in kind
    try:
        vmem_cap = int(pltpu.get_tpu_info().vmem_capacity_bytes)
    except Exception:
        vmem_cap = (64 << 20) if is_v7 else (128 << 20)
    num_cores = 2 if is_v7 else 1
    return vmem_cap, num_cores


def _pick_batch_block(B, C, H, W, budget_bytes, num_cores):
    """Largest batch block bt that (a) divides B, (b) is sublane-legal when tiling
    (bt % 8 == 0 or bt == B), (c) fits the VMEM budget with an honest footprint
    model, and (d) on multi-core chips prefers nblk >= num_cores."""
    CHW = C * H * W
    CHW_pad = _round_up(CHW, 128)                       # lane padding of feature slab
    Ho, Wo = H // KSIZE, W // KSIZE
    HoWo_pad = _round_up(Ho * Wo, 128)
    q_bytes = 2 * _round_up(CHW, 8) * HoWo_pad * 4      # pooling constant x2 pipeline bufs

    def footprint(bt):
        bt_pad = _round_up(bt, 8)
        feat = 2 * 2 * bt_pad * CHW_pad * 4             # s,t inputs x double buffer
        outs = 2 * 2 * bt_pad * HoWo_pad * 4            # pooled s,t outputs x2 buffers
        work = 3 * bt_pad * CHW_pad * 4                 # in-kernel f32 temporaries
        return q_bytes + feat + outs + work

    cands = [bt for bt in range(1, B + 1)
             if B % bt == 0 and (bt == B or bt % 8 == 0)]
    fitting = [bt for bt in cands if footprint(bt) <= budget_bytes]
    if not fitting:
        return min(cands)                               # minimize VMEM pressure
    if num_cores > 1:
        sharded = [bt for bt in fitting if B // bt >= num_cores]
        if sharded:
            return max(sharded)                         # v7x: use both TensorCores
    return max(fitting)                                 # v5e/v6e: fewest grid steps


def p_kd_forward(teacher_feat, student_feat):
    """Mirrors P_KD.forward(): returns (l_mid, conv_s, conv_t).

    l_mid is the returned loss; conv_s / conv_t mirror Transform_final's internal
    self.x side effect (dead w.r.t. the loss but part of the module's forward).
    """
    B, C, H, W = teacher_feat.shape
    assert teacher_feat.shape == student_feat.shape
    assert C == C_IN and H % KSIZE == 0 and W % KSIZE == 0
    Ho, Wo = H // KSIZE, W // KSIZE
    CHW = C * H * W
    HoWo = Ho * Wo

    vmem_cap, num_cores = _device_vmem_and_cores()
    budget = min(vmem_cap // 4, 32 << 20)               # generation-aware budget
    bt = _pick_batch_block(B, C, H, W, budget, num_cores)
    nblk = B // bt

    # lane-dense feature slabs (free wrapper reshapes)
    s2 = student_feat.reshape(B, CHW)
    t2 = teacher_feat.reshape(B, CHW)

    # Batch-independent 0/1 pooling matrix (built once with plain XLA):
    #   Q[c*H*W + h*W + w, ho*Wo + wo] = 1  iff  h//5 == ho and w//5 == wo
    # Folding the channel sum into Q makes the conv a single matmul whose FLOPs and
    # resident bytes are O(1) in the batch block.  It is small (~CHW x 128 lanes),
    # so default double-buffering of this constant is negligible (counted in the
    # footprint model above).
    j = jnp.arange(CHW)
    p = j % (H * W)
    hrow = (p // W) // KSIZE
    wcol = (p % W) // KSIZE
    qidx = jnp.arange(HoWo)
    qmat = ((hrow[:, None] == qidx[None, :] // Wo)
            & (wcol[:, None] == qidx[None, :] % Wo)).astype(jnp.float32)  # (CHW, HoWo)

    l1_parts, pooled_s, pooled_t = pl.pallas_call(
        _pkd_kernel,
        grid=(nblk,),
        in_specs=[
            pl.BlockSpec((bt, CHW), lambda i: (i, 0)),          # student slab
            pl.BlockSpec((bt, CHW), lambda i: (i, 0)),          # teacher slab
            pl.BlockSpec((CHW, HoWo), lambda i: (0, 0)),        # pooling constant
        ],
        out_specs=[
            pl.BlockSpec((1, 1), lambda i: (i, 0),
                         memory_space=pltpu.MemorySpace.SMEM),  # per-block |s-t| sum
            pl.BlockSpec((bt, HoWo), lambda i: (i, 0)),         # pooled student
            pl.BlockSpec((bt, HoWo), lambda i: (i, 0)),         # pooled teacher
        ],
        out_shape=(
            jax.ShapeDtypeStruct((nblk, 1), jnp.float32),
            jax.ShapeDtypeStruct((B, HoWo), jnp.float32),
            jax.ShapeDtypeStruct((B, HoWo), jnp.float32),
        ),
        compiler_params=pltpu.CompilerParams(
            dimension_semantics=("parallel",),                  # no resident accumulator
            vmem_limit_bytes=int(min(vmem_cap // 2, 64 << 20))),
    )(s2, t2, qmat)

    # finalize: L1Loss(reduction='mean'); l_mid = zeros(1) + loss
    l_mid = (jnp.sum(l1_parts) / jnp.float32(B * C * H * W)).reshape(1)

    conv_s = pooled_s.reshape(B, 1, Ho, Wo)
    conv_t = pooled_t.reshape(B, 1, Ho, Wo)
    return l_mid, conv_s, conv_t


if __name__ == "__main__":
    key = jax.random.PRNGKey(0)
    k1, k2 = jax.random.split(key)
    B, C, H, W = 2, 3, 20, 20   # conv_last outputs (3 channels, spatial divisible by 5)
    teacher_feat = jax.random.normal(k1, (B, C, H, W), dtype=jnp.float32)
    student_feat = jax.random.normal(k2, (B, C, H, W), dtype=jnp.float32)

    l_mid, conv_s, conv_t = p_kd_forward(teacher_feat, student_feat)
    jax.block_until_ready((l_mid, conv_s, conv_t))

    # pure-JAX reference
    ref_l1 = jnp.mean(jnp.abs(student_feat - teacher_feat)).reshape(1)
    Ho, Wo = H // KSIZE, W // KSIZE

    def ref_conv(x):
        xc = jnp.sum(x, axis=1)
        return xc.reshape(B, Ho, KSIZE, Wo, KSIZE).sum(axis=(2, 4)).reshape(B, 1, Ho, Wo)

    assert jnp.allclose(l_mid, ref_l1, rtol=1e-5, atol=1e-5)
    assert jnp.allclose(conv_s, ref_conv(student_feat), rtol=1e-5, atol=1e-4)
    assert jnp.allclose(conv_t, ref_conv(teacher_feat), rtol=1e-5, atol=1e-4)

    # TODO(synk): Transform_middle and the forward-hook registration machinery are
    # never exercised by P_KD.forward (dead code / framework plumbing), so they are
    # intentionally not lowered to Pallas.
    print("KERNEL_OK")
</pallas_src>

<mosaic_0001>
module attributes {stable_mosaic.version = 11 : i64} {
  func.func @_pkd_kernel(%arg0: i32, %arg1: memref<2x1200xf32, #tpu.memory_space<vmem>>, %arg2: memref<2x1200xf32, #tpu.memory_space<vmem>>, %arg3: memref<1200x16xf32, #tpu.memory_space<vmem>>, %arg4: memref<1x1xf32, #tpu.memory_space<smem>>, %arg5: memref<2x16xf32, #tpu.memory_space<vmem>>, %arg6: memref<2x16xf32, #tpu.memory_space<vmem>>) attributes {dimension_semantics = [#tpu.dimension_semantics<parallel>], iteration_bounds = array<i64: 1>, scalar_prefetch = 0 : i64, scratch_operands = 0 : i64, tpu.core_type = #tpu.core_type<tc>, window_params = [{transform_indices = @transform_0, window_bounds = array<i64: 2, 1200>}, {transform_indices = @transform_1, window_bounds = array<i64: 2, 1200>}, {pipeline_mode = #tpu.pipeline_mode<synchronous>, transform_indices = @transform_2, window_bounds = array<i64: 1200, 16>}, {transform_indices = @transform_3, window_bounds = array<i64: 1, 1>}, {transform_indices = @transform_4, window_bounds = array<i64: 2, 16>}, {transform_indices = @transform_5, window_bounds = array<i64: 2, 16>}]} {
    %c0 = arith.constant 0 : index
    %c0_0 = arith.constant 0 : index
    %0 = vector.load %arg1[%c0, %c0_0] : memref<2x1200xf32, #tpu.memory_space<vmem>>, vector<2x1200xf32>
    %c0_1 = arith.constant 0 : index
    %c0_2 = arith.constant 0 : index
    %1 = vector.load %arg2[%c0_1, %c0_2] : memref<2x1200xf32, #tpu.memory_space<vmem>>, vector<2x1200xf32>
    %2 = arith.subf %0, %1 : vector<2x1200xf32>
    %3 = math.absf %2 : vector<2x1200xf32>
    %4 = vector.shape_cast %3 : vector<2x1200xf32> to vector<1x2x1200xf32>
    %cst = arith.constant dense<0.000000e+00> : vector<1xf32>
    %5 = vector.multi_reduction <add>, %4, %cst [1, 2] : vector<1x2x1200xf32> to vector<1xf32>
    %6 = vector.shape_cast %5 : vector<1xf32> to vector<1x1x1xf32>
    %7 = vector.extract %6[0, 0, 0] : f32 from vector<1x1x1xf32>
    %c0_3 = arith.constant 0 : index
    %c0_4 = arith.constant 0 : index
    %8 = memref.load %arg4[%c0_3, %c0_4] : memref<1x1xf32, #tpu.memory_space<smem>>
    memref.store %7, %arg4[%c0_3, %c0_4] : memref<1x1xf32, #tpu.memory_space<smem>>
    %c0_5 = arith.constant 0 : index
    %c0_6 = arith.constant 0 : index
    %9 = vector.load %arg3[%c0_5, %c0_6] : memref<1200x16xf32, #tpu.memory_space<vmem>>, vector<1200x16xf32>
    %cst_7 = arith.constant dense<0.000000e+00> : vector<2x16xf32>
    %10 = tpu.matmul %0, %9, %cst_7 {dimension_numbers = #tpu.dot_dimension_numbers<[1], [0], [0], [1], [0, 0, 1, 1], [], []>} : vector<2x1200xf32>, vector<1200x16xf32>, vector<2x16xf32> -> vector<2x16xf32>
    %c0_8 = arith.constant 0 : index
    %c0_9 = arith.constant 0 : index
    %11 = vector.load %arg5[%c0_8, %c0_9] : memref<2x16xf32, #tpu.memory_space<vmem>>, vector<2x16xf32>
    tpu.vector_store %arg5[%c0_8, %c0_9], %10 {strides = array<i32>} : memref<2x16xf32, #tpu.memory_space<vmem>>, vector<2x16xf32>,
    %cst_10 = arith.constant dense<0.000000e+00> : vector<2x16xf32>
    %12 = tpu.matmul %1, %9, %cst_10 {dimension_numbers = #tpu.dot_dimension_numbers<[1], [0], [0], [1], [0, 0, 1, 1], [], []>} : vector<2x1200xf32>, vector<1200x16xf32>, vector<2x16xf32> -> vector<2x16xf32>
    %c0_11 = arith.constant 0 : index
    %c0_12 = arith.constant 0 : index
    %13 = vector.load %arg6[%c0_11, %c0_12] : memref<2x16xf32, #tpu.memory_space<vmem>>, vector<2x16xf32>
    tpu.vector_store %arg6[%c0_11, %c0_12], %12 {strides = array<i32>} : memref<2x16xf32, #tpu.memory_space<vmem>>, vector<2x16xf32>,
    return
  }
  func.func @transform_0(%arg0: i32) -> (i32, i32) {
    %c0_i32 = arith.constant 0 : i32
    %c0_i32_0 = arith.constant 0 : i32
    return %arg0, %c0_i32 : i32, i32
  }
  func.func @transform_1(%arg0: i32) -> (i32, i32) {
    %c0_i32 = arith.constant 0 : i32
    %c0_i32_0 = arith.constant 0 : i32
    return %arg0, %c0_i32 : i32, i32
  }
  func.func @transform_2(%arg0: i32) -> (i32, i32) {
    %c0_i32 = arith.constant 0 : i32
    %c0_i32_0 = arith.constant 0 : i32
    %c0_i32_1 = arith.constant 0 : i32
    return %c0_i32, %c0_i32_0 : i32, i32
  }
  func.func @transform_3(%arg0: i32) -> (i32, i32) {
    %c0_i32 = arith.constant 0 : i32
    %c0_i32_0 = arith.constant 0 : i32
    return %arg0, %c0_i32 : i32, i32
  }
  func.func @transform_4(%arg0: i32) -> (i32, i32) {
    %c0_i32 = arith.constant 0 : i32
    %c0_i32_0 = arith.constant 0 : i32
    return %arg0, %c0_i32 : i32, i32
  }
  func.func @transform_5(%arg0: i32) -> (i32, i32) {
    %c0_i32 = arith.constant 0 : i32
    %c0_i32_0 = arith.constant 0 : i32
    return %arg0, %c0_i32 : i32, i32
  }
}

</mosaic_0001>

<bundles_post_ra>
// kernel: tpu_custom_call.1
= control target key start
LH: loop header
LB: loop body
LE: loop exit
PB: predicated region body
PF: predicated region fallthrough
CT: control target
= control target key end

     0   :  { %11 = vsyncpa [#allocation4], 0  ;;  %s2007_s0 = inlined_call_operand.vmem [shape: f32[2,1200], index: 0, kind: input, shape index: {}]   ;;  %s2008_s1 = inlined_call_operand.vmem [shape: f32[2,1200], index: 1, kind: input, shape index: {}]   ;;  %s2009_s2 = inlined_call_operand.vmem [shape: f32[1200,16], index: 2, kind: input, shape index: {}]   ;;  %s2010_s3 = inlined_call_operand.hbm [shape: f32[1,1], index: 3, kind: output, shape index: {0}]   ;;  %s2011_s4 = inlined_call_operand.hbm [shape: f32[2,16], index: 4, kind: output, shape index: {1}]   ;;  %s2012_s5 = inlined_call_operand.hbm [shape: f32[2,16], index: 5, kind: output, shape index: {2}]  }
   0x1   :  { %12 = vsyncpa [#allocation3], 0  ;;  %v857_v0 = vld [vmem:[%s2009_s2 + $0x78] sm:$0xff]  ;;  %v867_v2 = vld [vmem:[%s2009_s2 + $0x70] sm:$0xff] }
   0x2   :  { %v862_v1 = vld [vmem:[%s2009_s2 + $0x178] sm:$0xff]  ;;  %270 = vmatpush.msra.mxu0 %v857_v0  ;;  %v874_v3 = vld [vmem:[%s2009_s2 + $0x170] sm:$0xff]  ;;  %v879_v4 = vld [vmem:[%s2009_s2 + $0x68] sm:$0xff] }
   0x3   :  { %310 = vmatpush.msra.mxu2 %v862_v1  ;;  %v884_v5 = vld [vmem:[%s2009_s2 + $0x168] sm:$0xff]  ;;  %v889_v6 = vld [vmem:[%s2009_s2 + $0xf8] sm:$0xff]  ;;  %v896_v7 = vld [vmem:[%s2009_s2 + $0xf0] sm:$0xff] }
   0x4   :  { %271 = vmatpush.msra.mxu0 %v867_v2  ;;  %290 = vmatpush.msra.mxu1 %v889_v6  ;;  %v902_v8 = vld [vmem:[%s2009_s2 + $0x60] sm:$0xff]  ;;  %v912_v10 = vld [vmem:[%s2009_s2 + $0x1f8] sm:$0xff]  ;;  %v919_v11 = vld [vmem:[%s2009_s2 + $0xe8] sm:$0xff] }
   0x5   :  { %311 = vmatpush.msra.mxu2 %v874_v3  ;;  %v907_v9 = vld [vmem:[%s2009_s2 + $0x160] sm:$0xff]  ;;  %v924_v12 = vld [vmem:[%s2009_s2 + $0x1f0] sm:$0xff]  ;;  %v930_v13 = vld [vmem:[%s2009_s2 + $0x58] sm:$0xff]  ;;  %330 = vmatpush.msra.mxu3 %v912_v10 }
   0x6   :  { %272 = vmatpush.msra.mxu0 %v879_v4  ;;  %2100 = vst [vmem:[#allocation11_spill] sm:$0xff] %v924_v12  ;;  %291 = vmatpush.msra.mxu1 %v896_v7  ;;  %v935_v14 = vld [vmem:[%s2009_s2 + $0x158] sm:$0xff]  ;;  %v943_v15 = vld [vmem:[%s2009_s2 + $0xe0] sm:$0xff]  ;;  %v948_v16 = vld [vmem:[%s2009_s2 + $0x1e8] sm:$0xff] }
   0x7   :  { %312 = vmatpush.msra.mxu2 %v884_v5  ;;  %2101 = vst [vmem:[#allocation12_spill] sm:$0xff] %v948_v16  ;;  %v954_v17 = vld [vmem:[%s2009_s2 + $0x50] sm:$0xff]  ;;  %331 = vmatpush.msra.mxu3 %v924_v12  ;;  %v967_v19 = vld [vmem:[%s2009_s2 + $0xd8] sm:$0xff]  ;;  %v972_v20 = vld [vmem:[%s2009_s2 + $0x1e0] sm:$0xff] }
   0x8   :  { %273 = vmatpush.msra.mxu0 %v902_v8  ;;  %292 = vmatpush.msra.mxu1 %v919_v11  ;;  %v959_v18 = vld [vmem:[%s2009_s2 + $0x150] sm:$0xff]  ;;  %2102 = vst [vmem:[#allocation13_spill] sm:$0xff] %v972_v20  ;;  %v978_v21 = vld [vmem:[%s2009_s2 + $0x48] sm:$0xff]  ;;  %v996_v24 = vld [vmem:[%s2009_s2 + $0x1d8] sm:$0xff] }
   0x9   :  { %313 = vmatpush.msra.mxu2 %v907_v9  ;;  %v983_v22 = vld [vmem:[%s2009_s2 + $0x148] sm:$0xff]  ;;  %332 = vmatpush.msra.mxu3 %v948_v16  ;;  %v991_v23 = vld [vmem:[%s2009_s2 + $0xd0] sm:$0xff]  ;;  %2103 = vst [vmem:[#allocation14_spill] sm:$0xff] %v996_v24  ;;  %v1002_v25 = vld [vmem:[%s2009_s2 + $0x40] sm:$0xff] }
   0xa   :  { %274 = vmatpush.msra.mxu0 %v930_v13  ;;  %293 = vmatpush.msra.mxu1 %v943_v15  ;;  %v1007_v26 = vld [vmem:[%s2009_s2 + $0x140] sm:$0xff]  ;;  %v1015_v27 = vld [vmem:[%s2009_s2 + $0xc8] sm:$0xff]  ;;  %v1020_v28 = vld [vmem:[%s2009_s2 + $0x1d0] sm:$0xff] }
   0xb   :  { %314 = vmatpush.msra.mxu2 %v935_v14  ;;  %333 = vmatpush.msra.mxu3 %v972_v20  ;;  %2104 = vst [vmem:[#allocation15_spill] sm:$0xff] %v1020_v28  ;;  %v1026_v29 = vld [vmem:[%s2009_s2 + $0x38] sm:$0xff]  ;;  %v1039_v31 = vld [vmem:[%s2009_s2 + $0xc0] sm:$0xff]  ;;  %v1044_v32 = vld [vmem:[%s2009_s2 + $0x1c8] sm:$0xff] }
   0xc   :  { %275 = vmatpush.msra.mxu0 %v954_v17  ;;  %294 = vmatpush.msra.mxu1 %v967_v19  ;;  %v1031_v30 = vld [vmem:[%s2009_s2 + $0x138] sm:$0xff]  ;;  %2105 = vst [vmem:[#allocation16_spill] sm:$0xff] %v1044_v32  ;;  %v1050_v33 = vld [vmem:[%s2009_s2 + $0x30] sm:$0xff]  ;;  %v1068_v36 = vld [vmem:[%s2009_s2 + $0x1c0] sm:$0xff] }
   0xd   :  { %315 = vmatpush.msra.mxu2 %v959_v18  ;;  %334 = vmatpush.msra.mxu3 %v996_v24  ;;  %v1055_v34 = vld [vmem:[%s2009_s2 + $0x130] sm:$0xff]  ;;  %v1063_v35 = vld [vmem:[%s2009_s2 + $0xb8] sm:$0xff]  ;;  %2107 = vst [vmem:[#allocation18_spill] sm:$0xff] %v1068_v36  ;;  %v1074_v37 = vld [vmem:[%s2009_s2 + $0x28] sm:$0xff] }
   0xe   :  { %276 = vmatpush.msra.mxu0 %v978_v21  ;;  %295 = vmatpush.msra.mxu1 %v991_v23  ;;  %2106 = vst [vmem:[#allocation17_spill] sm:$0xff] %v1055_v34  ;;  %v1079_v38 = vld [vmem:[%s2009_s2 + $0x128] sm:$0xff]  ;;  %v1087_v39 = vld [vmem:[%s2009_s2 + $0xb0] sm:$0xff]  ;;  %v1092_v40 = vld [vmem:[%s2009_s2 + $0x1b8] sm:$0xff] }
   0xf   :  { %316 = vmatpush.msra.mxu2 %v983_v22  ;;  %335 = vmatpush.msra.mxu3 %v1020_v28  ;;  %2108 = vst [vmem:[#allocation19_spill] sm:$0xff] %v1079_v38  ;;  %v1098_v41 = vld [vmem:[%s2009_s2 + $0x20] sm:$0xff]  ;;  %v1111_v43 = vld [vmem:[%s2009_s2 + $0xa8] sm:$0xff]  ;;  %v1116_v44 = vld [vmem:[%s2009_s2 + $0x1b0] sm:$0xff] }
  0x10   :  { %277 = vmatpush.msra.mxu0 %v1002_v25  ;;  %296 = vmatpush.msra.mxu1 %v1015_v27  ;;  %2109 = vst [vmem:[#allocation20_spill] sm:$0xff] %v1092_v40  ;;  %v1103_v42 = vld [vmem:[%s2009_s2 + $0x120] sm:$0xff]  ;;  %v1122_v45 = vld [vmem:[%s2009_s2 + $0x18] sm:$0xff]  ;;  %v1140_v48 = vld [vmem:[%s2009_s2 + $0x1a8] sm:$0xff] }
  0x11   :  { %317 = vmatpush.msra.mxu2 %v1007_v26  ;;  %336 = vmatpush.msra.mxu3 %v1044_v32  ;;  %2110 = vst [vmem:[#allocation21_spill] sm:$0xff] %v1103_v42  ;;  %v1127_v46 = vld [vmem:[%s2009_s2 + $0x118] sm:$0xff]  ;;  %v1135_v47 = vld [vmem:[%s2009_s2 + $0xa0] sm:$0xff]  ;;  %v1146_v49 = vld [vmem:[%s2009_s2 + $0x10] sm:$0xff] }
  0x12   :  { %278 = vmatpush.msra.mxu0 %v1026_v29  ;;  %297 = vmatpush.msra.mxu1 %v1039_v31  ;;  %2111 = vst [vmem:[#allocation22_spill] sm:$0xff] %v1116_v44  ;;  %v1151_v50 = vld [vmem:[%s2009_s2 + $0x110] sm:$0xff]  ;;  %v1159_v51 = vld [vmem:[%s2009_s2 + $0x98] sm:$0xff]  ;;  %v1164_v52 = vld [vmem:[%s2009_s2 + $0x1a0] sm:$0xff] }
  0x13   :  { %318 = vmatpush.msra.mxu2 %v1031_v30  ;;  %337 = vmatpush.msra.mxu3 %v1068_v36  ;;  %2112 = vst [vmem:[#allocation23_spill] sm:$0xff] %v1127_v46  ;;  %v1170_v53 = vld [vmem:[%s2009_s2 + $0x8] sm:$0xff]  ;;  %v1183_v55 = vld [vmem:[%s2009_s2 + $0x90] sm:$0xff]  ;;  %v1188_v56 = vld [vmem:[%s2009_s2 + $0x198] sm:$0xff] }
  0x14   :  { %279 = vmatpush.msra.mxu0 %v1050_v33  ;;  %298 = vmatpush.msra.mxu1 %v1063_v35  ;;  %2113 = vst [vmem:[#allocation24_spill] sm:$0xff] %v1140_v48  ;;  %v1175_v54 = vld [vmem:[%s2009_s2 + $0x108] sm:$0xff]  ;;  %v1194_v57 = vld [vmem:[%s2009_s2] sm:$0xff]  ;;  %v1207_v59 = vld [vmem:[%s2009_s2 + $0x278] sm:$0xff] }
  0x15   :  { %319 = vmatpush.msra.mxu2 %v1055_v34  ;;  %338 = vmatpush.msra.mxu3 %v1092_v40  ;;  %2114 = vst [vmem:[#allocation25_spill] sm:$0xff] %v1151_v50  ;;  %v1199_v58 = vld [vmem:[%s2009_s2 + $0x100] sm:$0xff]  ;;  %v1212_v60 = vld [vmem:[%s2009_s2 + $0x378] sm:$0xff]  ;;  %v1219_v61 = vld [vmem:[%s2009_s2 + $0x88] sm:$0xff] }
  0x16   :  { %280 = vmatpush.msra.mxu0 %v1074_v37  ;;  %299 = vmatpush.msra.mxu1 %v1087_v39  ;;  %2115 = vst [vmem:[#allocation26_spill] sm:$0xff] %v1164_v52  ;;  %v1224_v62 = vld [vmem:[%s2009_s2 + $0x190] sm:$0xff]  ;;  %v1267_v40 = vld [vmem:[%s2009_s2 + $0x2f8] sm:$0xff]  ;;  %v1315_v32 = vld [vmem:[%s2009_s2 + $0x2e8] sm:$0xff] }
  0x17   :  { %320 = vmatpush.msra.mxu2 %v1079_v38  ;;  %339 = vmatpush.msra.mxu3 %v1116_v44  ;;  %2116 = vst [vmem:[#allocation27_spill] sm:$0xff] %v1175_v54  ;;  %v1231_v63 = vld [vmem:[%s2009_s2 + $0x270] sm:$0xff]  ;;  %v1255_v44 = vld [vmem:[%s2009_s2 + $0x268] sm:$0xff]  ;;  %v1349_v28 = vld [vmem:[%s2007_s0] sm:$0xff] }
  0x18   :  { %281 = vmatpush.msra.mxu0 %v1098_v41  ;;  %300 = vmatpush.msra.mxu1 %v1111_v43  ;;  %2117 = vst [vmem:[#allocation28_spill] sm:$0xff] %v1183_v55  ;;  %v1291_v36 = vld [vmem:[%s2009_s2 + $0x2f0] sm:$0xff] }
  0x19   :  { %321 = vmatpush.msra.mxu2 %v1103_v42  ;;  %340 = vmatpush.msra.mxu3 %v1140_v48  ;;  %2118 = vst [vmem:[#allocation29_spill] sm:$0xff] %v1188_v56  ;;  %v1248_v48 = vld [vmem:[%s2009_s2 + $0x188] sm:$0xff]  ;;  %v1397_v24 = vld [vmem:[%s2009_s2 + $0x2d0] sm:$0xff]  ;;  %v1402_v42 = vld [vmem:[%s2009_s2 + $0x3d8] sm:$0xff] }
  0x1a   :  { %282 = vmatpush.msra.mxu0 %v1122_v45  ;;  %301 = vmatpush.msra.mxu1 %v1135_v47  ;;  %2119 = vst [vmem:[#allocation30_spill] sm:$0xff] %v1199_v58 }
  0x1b   :  { %322 = vmatpush.msra.mxu2 %v1127_v46  ;;  %341 = vmatpush.msra.mxu3 %v1164_v52  ;;  %2120 = vst [vmem:[#allocation31_spill] sm:$0xff] %v1212_v60  ;;  %v1243_v52 = vld [vmem:[%s2009_s2 + $0x80] sm:$0xff]  ;;  %v1361_v46 = vld [vmem:[%s2009_s2 + $0x348] sm:$0xff] }
  0x1c   :  { %283 = vmatpush.msra.mxu0 %v1146_v49  ;;  %302 = vmatpush.msra.mxu1 %v1159_v51  ;;  %2121 = vst [vmem:[#allocation32_spill] sm:$0xff] %v1219_v61 }
  0x1d   :  { %323 = vmatpush.msra.mxu2 %v1151_v50  ;;  %342 = vmatpush.msra.mxu3 %v1188_v56  ;;  %2122 = vst [vmem:[#allocation33_spill] sm:$0xff] %v1224_v62  ;;  %v1236_v56 = vld [vmem:[%s2009_s2 + $0x370] sm:$0xff] }
  0x1e   :  { %284 = vmatpush.msra.mxu0 %v1170_v53  ;;  %303 = vmatpush.msra.mxu1 %v1183_v55  ;;  %2123 = vst [vmem:[#allocation34_spill] sm:$0xff] %v1236_v56  ;;  %v1327_v50 = vld [vmem:[%s2009_s2 + $0x250] sm:$0xff] }
  0x1f   :  { %324 = vmatpush.msra.mxu2 %v1175_v54  ;;  %2124 = vst [vmem:[#allocation35_spill] sm:$0xff] %v1243_v52  ;;  %343 = vmatpush.msra.mxu3 %v1224_v62  ;;  %v1272_v62 = vld [vmem:[%s2009_s2 + $0x180] sm:$0xff]  ;;  %v1303_v54 = vld [vmem:[%s2009_s2 + $0x258] sm:$0xff] }
  0x20   :  { %285 = vmatpush.msra.mxu0 %v1194_v57  ;;  %2125 = vst [vmem:[#allocation36_spill] sm:$0xff] %v1248_v48  ;;  %304 = vmatpush.msra.mxu1 %v1219_v61 }
  0x21   :  { %325 = vmatpush.msra.mxu2 %v1199_v58  ;;  %2126 = vst [vmem:[#allocation37_spill] sm:$0xff] %v1255_v44  ;;  %344 = vmatpush.msra.mxu3 %v1248_v48  ;;  %v1279_v58 = vld [vmem:[%s2009_s2 + $0x260] sm:$0xff]  ;;  %v1296_v48 = vld [vmem:[%s2009_s2 + $0x3f8] sm:$0xff] }
  0x22   :  { %350 = vmatpush.msrb.mxu0 %v1207_v59  ;;  %2128 = vst [vmem:[#allocation39_spill] sm:$0xff] %v1267_v40  ;;  %305 = vmatpush.msra.mxu1 %v1243_v52 }
  0x23   :  { %390 = vmatpush.msrb.mxu2 %v1212_v60  ;;  %v1260_v60 = vld [vmem:[%s2009_s2 + $0x368] sm:$0xff]  ;;  %2129 = vst [vmem:[#allocation40_spill] sm:$0xff] %v1272_v62  ;;  %345 = vmatpush.msra.mxu3 %v1272_v62  ;;  %v1320_v62 = vld [vmem:[%s2009_s2 + $0x3f0] sm:$0xff] }
  0x24   :  { %2127 = vst [vmem:[#allocation38_spill] sm:$0xff] %v1260_v60  ;;  %351 = vmatpush.msrb.mxu0 %v1231_v63  ;;  %370 = vmatpush.msrb.mxu1 %v1267_v40  ;;  %v1366_v40 = vld [vmem:[%s2008_s1] sm:$0xff] }
  0x25   :  { %391 = vmatpush.msrb.mxu2 %v1236_v56  ;;  %2130 = vst [vmem:[#allocation41_spill] sm:$0xff] %v1279_v58  ;;  %v1284_v56 = vld [vmem:[%s2009_s2 + $0x360] sm:$0xff]  ;;  %410 = vmatpush.msrb.mxu3 %v1296_v48 }
  0x26   :  { %2131 = vst [vmem:[#allocation42_spill] sm:$0xff] %v1284_v56  ;;  %352 = vmatpush.msrb.mxu0 %v1255_v44  ;;  %371 = vmatpush.msrb.mxu1 %v1291_v36 }
  0x27   :  { %392 = vmatpush.msrb.mxu2 %v1260_v60  ;;  %2132 = vst [vmem:[#allocation43_spill] sm:$0xff] %v1291_v36  ;;  %v1308_v60 = vld [vmem:[%s2009_s2 + $0x358] sm:$0xff]  ;;  %v1339_v36 = vld [vmem:[%s2009_s2 + $0x2e0] sm:$0xff]  ;;  %411 = vmatpush.msrb.mxu3 %v1320_v62 }
  0x28   :  { %2133 = vst [vmem:[#allocation44_spill] sm:$0xff] %v1296_v48  ;;  %353 = vmatpush.msrb.mxu0 %v1279_v58  ;;  %v1344_v48 = vld [vmem:[%s2009_s2 + $0x3e8] sm:$0xff]  ;;  %372 = vmatpush.msrb.mxu1 %v1315_v32 }
  0x29   :  { %2134 = vst [vmem:[#allocation45_spill] sm:$0xff] %v1303_v54  ;;  %393 = vmatpush.msrb.mxu2 %v1284_v56  ;;  %v1332_v56 = vld [vmem:[%s2009_s2 + $0x350] sm:$0xff]  ;;  %412 = vmatpush.msrb.mxu3 %v1344_v48  ;;  %v1431_v58 = vld [vmem:[%s2007_s0 + $0x8] sm:$0xff] }
  0x2a   :  { %2135 = vst [vmem:[#allocation46_spill] sm:$0xff] %v1308_v60  ;;  %354 = vmatpush.msrb.mxu0 %v1303_v54  ;;  %v1383_v54 = vld [vmem:[%s2009_s2 + $0x3e0] sm:$0xff]  ;;  %373 = vmatpush.msrb.mxu1 %v1339_v36 }
  0x2b   :  { %2136 = vst [vmem:[#allocation47_spill] sm:$0xff] %v1315_v32  ;;  %394 = vmatpush.msrb.mxu2 %v1308_v60  ;;  %v1356_v60 = vld [vmem:[%s2009_s2 + $0x248] sm:$0xff]  ;;  %v1378_v32 = vld [vmem:[%s2009_s2 + $0x240] sm:$0xff]  ;;  %413 = vmatpush.msrb.mxu3 %v1383_v54 }
  0x2c   :  { %2137 = vst [vmem:[#allocation48_spill] sm:$0xff] %v1320_v62  ;;  %355 = vmatpush.msrb.mxu0 %v1327_v50  ;;  %v1373_v62 = vld [vmem:[%s2009_s2 + $0x2d8] sm:$0xff] }
  0x2d   :  { %2138 = vst [vmem:[#allocation49_spill] sm:$0xff] %v1327_v50  ;;  %395 = vmatpush.msrb.mxu2 %v1332_v56  ;;  %v26_v50 = vsub.f32 %v1349_v28, %v1366_v40  ;;  %374 = vmatpush.msrb.mxu1 %v1373_v62 }
  0x2e   :  { %2139 = vst [vmem:[#allocation50_spill] sm:$0xff] %v1332_v56  ;;  %v1392_v56 = vld [vmem:[%s2009_s2 + $0x340] sm:$0xff]  ;;  %356 = vmatpush.msrb.mxu0 %v1356_v60  ;;  %414 = vmatpush.msrb.mxu3 %v1402_v42 }
  0x2f   :  { %2140 = vst [vmem:[#allocation51_spill] sm:$0xff] %v1339_v36  ;;  %396 = vmatpush.msrb.mxu2 %v1361_v46  ;;  %v1414_v36 = vld [vmem:[%s2008_s1 + $0x10] sm:$0xf]  ;;  %v29_v52 = vand.u32 2147483647, %v26_v50  ;;  %v1438_v50 = vld [vmem:[%s2009_s2 + $0x2c8] sm:$0xff]  ;;  %375 = vmatpush.msrb.mxu1 %v1397_v24 }
  0x30   :  { %2141 = vst [vmem:[#allocation52_spill] sm:$0xff] %v1344_v48  ;;  %v1409_v48 = vld [vmem:[%s2007_s0 + $0x10] sm:$0xf]  ;;  %357 = vmatpush.msrb.mxu0 %v1378_v32 }
  0x31   :  { %2142 = vst [vmem:[#allocation53_spill] sm:$0xff] %v1356_v60  ;;  %v1421_v60 = vld [vmem:[%s2009_s2 + $0x238] sm:$0xff]  ;;  %397 = vmatpush.msrb.mxu2 %v1392_v56 }
  0x32   :  { %2143 = vst [vmem:[#allocation54_spill] sm:$0xff] %v1361_v46  ;;  %v1426_v46 = vld [vmem:[%s2009_s2 + $0x338] sm:$0xff] }
  0x33   :  { %2144 = vst [vmem:[#allocation55_spill] sm:$0xff] %v1373_v62  ;;  %v1448_v62 = vld [vmem:[%s2008_s1 + $0x8] sm:$0xff] }
  0x34   :  { %2145 = vst [vmem:[#allocation56_spill] sm:$0xff] %v1378_v32  ;;  %v1460_v32 = vld [vmem:[%s2009_s2 + $0x330] sm:$0xff]  ;;  %v27_v20 = vsub.f32 %v1431_v58, %v1448_v62 }
  0x35   :  { %2146 = vst [vmem:[#allocation57_spill] sm:$0xff] %v1383_v54  ;;  %v1443_v54 = vld [vmem:[%s2009_s2 + $0x3d0] sm:$0xff] }
  0x36   :  { %2147 = vst [vmem:[#allocation58_spill] sm:$0xff] %v1392_v56  ;;  %v1455_v56 = vld [vmem:[%s2009_s2 + $0x230] sm:$0xff] }
  0x37   :  { %2148 = vst [vmem:[#allocation59_spill] sm:$0xff] %v1397_v24 }
  0x38   :  { %2149 = vst [vmem:[#allocation60_spill] sm:$0xff] %v1402_v42 }
  0x39   :  { %2150 = vst [vmem:[#allocation61_spill] sm:$0xff] %v1414_v36 }
  0x3a   :  { %2151 = vst [vmem:[#allocation62_spill] sm:$0xff] %v1421_v60 }
  0x3b   :  { %2152 = vst [vmem:[#allocation63_spill] sm:$0xff] %v1426_v46 }
  0x3c   :  { %2153 = vst [vmem:[#allocation64_spill] sm:$0xff] %v1438_v50 }
  0x3d   :  { %2154 = vst [vmem:[#allocation65_spill] sm:$0xff] %v1443_v54 }
  0x3e   :  { %35 = vst [vmem:[#allocation1] ss:$4 sm:$0xff] %v29_v52  ;;  %v28_v52 = vsub.f32 %v1409_v48, %v1414_v36 }
  0x3f   :  { %2155 = vst [vmem:[#allocation66_spill] sm:$0xff] %v1455_v56 }
  0x40   :  { %2156 = vst [vmem:[#allocation67_spill] sm:$0xff] %v1460_v32 }
  0x41   :  { %13 = vsyncpa [#allocation7], 0  ;;  %358 = vmatpush.msrb.mxu0 %v1421_v60  ;;  %398 = vmatpush.msrb.mxu2 %v1426_v46  ;;  %v1471_v42 = vld [vmem:[%s2009_s2 + $0x2c0] sm:$0xff]  ;;  %v1476_v24 = vld [vmem:[%s2009_s2 + $0x228] sm:$0xff]  ;;  %v30_v61 = vand.u32 2147483647, %v27_v20 }
  0x42   :  { %2157 = vst [vmem:[#allocation68_spill] sm:$0xff] %v1471_v42  ;;  %v1481_v36 = vld [vmem:[%s2009_s2 + $0x3c8] sm:$0xff]  ;;  %376 = vmatpush.msrb.mxu1 %v1438_v50  ;;  %415 = vmatpush.msrb.mxu3 %v1443_v54  ;;  %v1493_v60 = vld [vmem:[%s2009_s2 + $0x2b8] sm:$0xff]  ;;  %v1498_v38 = vld [vmem:[%s2009_s2 + $0x220] sm:$0xff]  ;;  %vm59_vm0 = vcmask 1041408   ;;  %vm267_vm1 = vcmask 392192  }
  0x43   :  { %2158 = vst [vmem:[#allocation69_spill] sm:$0xff] %v1476_v24  ;;  %v1488_v46 = vld [vmem:[%s2009_s2 + $0x328] sm:$0xff]  ;;  %359 = vmatpush.msrb.mxu0 %v1455_v56  ;;  %399 = vmatpush.msrb.mxu2 %v1460_v32  ;;  %v1505_v54 = vld [vmem:[%s2009_s2 + $0x320] sm:$0xff]  ;;  %v1515_v44 = vld [vmem:[%s2009_s2 + $0x2b0] sm:$0xff]  ;;  %v31_v56 = vand.u32 2147483647, %v28_v52 }
  0x44   :  { %2159 = vst [vmem:[#allocation70_spill] sm:$0xff] %v1481_v36  ;;  %v1510_v50 = vld [vmem:[%s2009_s2 + $0x3c0] sm:$0xff]  ;;  %377 = vmatpush.msrb.mxu1 %v1471_v42  ;;  %416 = vmatpush.msrb.mxu3 %v1481_v36  ;;  %v1522_v20 = vld [vmem:[%s2009_s2 + $0x218] sm:$0xff]  ;;  %v1539_v42 = vld [vmem:[%s2009_s2 + $0x2a8] sm:$0xff]  ;;  %vm77_vm2 = vcmask 386048   ;;  %s717_s23 = sshll.u32 %s2011_s4, 4  ;;  %s718_s23 = int_to_ptr.hbm [resolvable:$true] %s717_s23 }
  0x45   :  { %2160 = vst [vmem:[#allocation71_spill] sm:$0xff] %v1488_v46  ;;  %v1527_v32 = vld [vmem:[%s2009_s2 + $0x318] sm:$0xff]  ;;  %360 = vmatpush.msrb.mxu0 %v1476_v24  ;;  %400 = vmatpush.msrb.mxu2 %v1488_v46  ;;  %v1544_v16 = vld [vmem:[%s2009_s2 + $0x3b0] sm:$0xff]  ;;  %v1553_v52 = vld.sshfl [vmem:[#allocation1] sm:$0xff pattern:$0x73625140] }
  0x46   :  { %2161 = vst [vmem:[#allocation72_spill] sm:$0xff] %v1493_v60  ;;  %v1534_v36 = vld [vmem:[%s2009_s2 + $0x3b8] sm:$0xff]  ;;  %378 = vmatpush.msrb.mxu1 %v1493_v60  ;;  %417 = vmatpush.msrb.mxu3 %v1510_v50  ;;  %v1555_v46 = vld.sshfl [vmem:[#allocation1 + $0x8] sm:$0xff pattern:$0x73625140]  ;;  %v1573_v60 = vld [vmem:[%s2009_s2 + $0x2a0] sm:$0xff] }
  0x47   :  { %2162 = vst [vmem:[#allocation73_spill] sm:$0xff] %v1498_v38  ;;  %361 = vmatpush.msrb.mxu0 %v1498_v38  ;;  %401 = vmatpush.msrb.mxu2 %v1505_v54  ;;  %v1559_v24 = vld.sshfl [vmem:[#allocation1 + $0x10] sm:$0xff pattern:$0x73625140]  ;;  %v1595_v38 = vld [vmem:[%s2009_s2 + $0x298] sm:$0xff]  ;;  %vm470_vm3 = vcmask 123904  }
  0x48   :  { %2163 = vst [vmem:[#allocation74_spill] sm:$0xff] %v1505_v54  ;;  %v1561_v34 = vld.sshfl [vmem:[#allocation1 + $0x18] sm:$0xff pattern:$0x73625140]  ;;  %379 = vmatpush.msrb.mxu1 %v1515_v44  ;;  %418 = vmatpush.msrb.mxu3 %v1534_v36  ;;  %v1578_v54 = vld [vmem:[%s2009_s2 + $0x208] sm:$0xff]  ;;  %s706_s25 = sshll.u32 %s2010_s3, 4  ;;  %s707_s25 = int_to_ptr.hbm [resolvable:$true] %s706_s25 }
  0x49   :  { %2164 = vst [vmem:[#allocation75_spill] sm:$0xff] %v1510_v50  ;;  %v1568_v50 = vld [vmem:[%s2009_s2 + $0x310] sm:$0xff]  ;;  %362 = vmatpush.msrb.mxu0 %v1522_v20  ;;  %402 = vmatpush.msrb.mxu2 %v1527_v32  ;;  %s822_s27 = smov [#allocation2]   ;;  %s823_s28 = smov [#allocation6]  }
  0x4a   :  { %2165 = vst [vmem:[#allocation76_spill] sm:$0xff] %v1515_v44  ;;  %v1590_v44 = vld [vmem:[%s2009_s2 + $0x3a8] sm:$0xff]  ;;  %380 = vmatpush.msrb.mxu1 %v1539_v42  ;;  %419 = vmatpush.msrb.mxu3 %v1544_v16  ;;  %s726_s29 = sshll.u32 %s823_s28, 4  ;;  %s728_s7 = sshll.u32 %s2012_s5, 4  ;;  %s727_s29 = int_to_ptr.vmem [resolvable:$true] %s726_s29  ;;  %s729_s7 = int_to_ptr.hbm [resolvable:$true] %s728_s7 }
  0x4b   :  { %2166 = vst [vmem:[#allocation77_spill] sm:$0xff] %v1522_v20  ;;  %v1612_v20 = vld [vmem:[%s2009_s2 + $0x3a0] sm:$0xff]  ;;  %403 = vmatpush.msrb.mxu2 %v1568_v50 }
  0x4c   :  { %2167 = vst [vmem:[#allocation78_spill] sm:$0xff] %v1527_v32  ;;  %v1607_v32 = vld [vmem:[%s2009_s2 + $0x300] sm:$0xff]  ;;  %381 = vmatpush.msrb.mxu1 %v1573_v60  ;;  %420 = vmatpush.msrb.mxu3 %v1590_v44 }
  0x4d   :  { %37 = vst [vmem:[#allocation1 + $0x20] ss:$4 sm:$0xff] %v30_v61  ;;  %v1551_v61 = vld [vmem:[%s2009_s2 + $0x210] sm:$0xff] }
  0x4e   :  { %2168 = vst [vmem:[#allocation79_spill] sm:$0xff] %v1534_v36  ;;  %v1585_v36 = vld [vmem:[%s2009_s2 + $0x308] sm:$0xff]  ;;  %363 = vmatpush.msrb.mxu0 %v1551_v61  ;;  %382 = vmatpush.msrb.mxu1 %v1595_v38 }
  0x4f   :  { %2169 = vst [vmem:[#allocation80_spill] sm:$0xff] %v1539_v42  ;;  %404 = vmatpush.msrb.mxu2 %v1585_v36  ;;  %421 = vmatpush.msrb.mxu3 %v1612_v20 }
  0x50   :  { %2170 = vst [vmem:[#allocation81_spill] sm:$0xff] %v1544_v16  ;;  %364 = vmatpush.msrb.mxu0 %v1578_v54 }
  0x51   :  { %2171 = vst [vmem:[#allocation82_spill] sm:$0xff] %v1551_v61  ;;  %v1636_v61 = vld [vmem:[%s2009_s2 + $0x398] sm:$0xff]  ;;  %405 = vmatpush.msrb.mxu2 %v1607_v32 }
  0x52   :  { %2172 = vst [vmem:[#allocation83_spill] sm:$0xff] %v1568_v50  ;;  %v1631_v50 = vld [vmem:[%s2009_s2 + $0x290] sm:$0xff]  ;;  %422 = vmatpush.msrb.mxu3 %v1636_v61 }
  0x53   :  { %2173 = vst [vmem:[#allocation84_spill] sm:$0xff] %v1573_v60  ;;  %383 = vmatpush.msrb.mxu1 %v1631_v50 }
  0x54   :  { %2174 = vst [vmem:[#allocation85_spill] sm:$0xff] %v1578_v54  ;;  %v1616_v16 = vld.sshfl [vmem:[#allocation1 + $0x20] sm:$0xff pattern:$0x73625140]  ;;  %v1682_v54 = vld [vmem:[%s2009_s2 + $0x478] sm:$0xff] }
  0x55   :  { %46 = vst [vmem:[#allocation1] ss:$4 sm:$0xff] %v31_v56  ;;  %v1602_v56 = vld [vmem:[%s2009_s2 + $0x200] sm:$0xff]  ;;  %v1618_v42 = vld.sshfl [vmem:[#allocation1 + $0x28] sm:$0xff pattern:$0x73625140] }
  0x56   :  { %2175 = vst [vmem:[#allocation86_spill] sm:$0xff] %v1585_v36  ;;  %v1622_v55 = vld.sshfl [vmem:[#allocation1 + $0x30] sm:$0xff pattern:$0x73625140]  ;;  %365 = vmatpush.msrb.mxu0 %v1602_v56 }
  0x57   :  { %2176 = vst [vmem:[#allocation87_spill] sm:$0xff] %v1590_v44  ;;  %v1624_v12 = vld.sshfl [vmem:[#allocation1 + $0x38] sm:$0xff pattern:$0x73625140]  ;;  %v1644_v44 = vld [vmem:[%s2009_s2 + $0x288] sm:$0xff]  ;;  %v1649_v36 = vld [vmem:[%s2009_s2 + $0x390] sm:$0xff] }
  0x58   :  { %2177 = vst [vmem:[#allocation88_spill] sm:$0xff] %v1595_v38  ;;  %v1668_v38 = vld [vmem:[%s2009_s2 + $0x388] sm:$0xff]  ;;  %384 = vmatpush.msrb.mxu1 %v1644_v44  ;;  %423 = vmatpush.msrb.mxu3 %v1649_v36 }
  0x59   :  { %2178 = vst [vmem:[#allocation89_spill] sm:$0xff] %v1602_v56 }
  0x5a   :  { %2179 = vst [vmem:[#allocation90_spill] sm:$0xff] %v1607_v32  ;;  %424 = vmatpush.msrb.mxu3 %v1668_v38 }
  0x5b   :  { %2180 = vst [vmem:[#allocation91_spill] sm:$0xff] %v1612_v20  ;;  %v1663_v20 = vld [vmem:[%s2009_s2 + $0x280] sm:$0xff] }
  0x5c   :  { %2181 = vst [vmem:[#allocation92_spill] sm:$0xff] %v1631_v50  ;;  %v1653_v60 = vld.sshfl [vmem:[#allocation1] sm:$0xff pattern:$0x73625140]  ;;  %385 = vmatpush.msrb.mxu1 %v1663_v20 }
  0x5d   :  { %2182 = vst [vmem:[#allocation93_spill] sm:$0xff] %v1636_v61 }
  0x5e   :  { %246 = vst [vmem:[#allocation1 + $0x20] ss:$4 sm:$0xff] %v1431_v58  ;;  %v1655_v58 = vld.sshfl [vmem:[#allocation1 + $0x8] sm:$0xff pattern:$0x73625140] }
  0x5f   :  { %2183 = vst [vmem:[#allocation94_spill] sm:$0xff] %v1644_v44 }
  0x60   :  { %2184 = vst [vmem:[#allocation95_spill] sm:$0xff] %v1649_v36  ;;  %v1687_v36 = vld [vmem:[%s2009_s2 + $0x470] sm:$0xff] }
  0x61   :  { %2185 = vst [vmem:[#allocation96_spill] sm:$0xff] %v1653_v60  ;;  %v1697_v60 = vld [vmem:[%s2009_s2 + $0x4a8] sm:$0xff] }
  0x62   :  { %2186 = vst [vmem:[#allocation97_spill] sm:$0xff] %v1655_v58 }
  0x63   :  { %244 = vst [vmem:[#allocation1] ss:$4 sm:$0xff] %v1349_v28  ;;  %v1675_v28 = vld [vmem:[%s2009_s2 + $0x380] sm:$0xff] }
  0x64   :  { %2187 = vst [vmem:[#allocation98_spill] sm:$0xff] %v1663_v20  ;;  %425 = vmatpush.msrb.mxu3 %v1675_v28 }
  0x65   :  { %2188 = vst [vmem:[#allocation99_spill] sm:$0xff] %v1668_v38  ;;  %v253_v61 = vld.sshfl [vmem:[#allocation1 + $0x30] sm:$0xff pattern:$0x73625140] }
  0x66   :  { %v251_v32 = vld.sshfl [vmem:[#allocation1 + $0x20] sm:$0xff pattern:$0x73625140]  ;;  %v254_v50 = vld.sshfl [vmem:[#allocation1 + $0x38] sm:$0xff pattern:$0x73625140] }
  0x67   :  { %v252_v56 = vld.sshfl [vmem:[#allocation1 + $0x28] sm:$0xff pattern:$0x73625140] }
  0x68   :  { %477 = vst [vmem:[#allocation1 + $0x20] ss:$4 sm:$0xff] %v1448_v62  ;;  %v1702_v62 = vld [vmem:[%s2009_s2 + $0x468] sm:$0xff] }
  0x6a   :  { %v247_v20 = vld.sshfl [vmem:[#allocation1] sm:$0xff pattern:$0x73625140]  ;;  %v249_v38 = vld.sshfl [vmem:[#allocation1 + $0x10] sm:$0xff pattern:$0x73625140] }
  0x6b   :  { %286 = vmatmul.f32.vlgmr.msra.gmra.mxu0 %v247_v20  ;;  %326 = vmatmul.f32.vlgmr.msra.gmra.mxu2 %v249_v38  ;;  %v250_v44 = vld.sshfl [vmem:[#allocation1 + $0x18] sm:$0xff pattern:$0x73625140]  ;;  %v248_v58 = vld.sshfl [vmem:[#allocation1 + $0x8] sm:$0xff pattern:$0x73625140] }
  0x6c   :  { %430 = vmatpush.msra.mxu0 %v1682_v54  ;;  %500 = vmatpush.msra.mxu2 %v857_v0  ;;  %255 = vst [vmem:[#allocation1] ss:$4 sm:$0xff] %v1409_v48  ;;  %v1709_v0 = vld [vmem:[%s2009_s2 + $0x4a0] sm:$0xff]  ;;  %v61_v20 = vsel %vm59_vm0, %v1555_v46, 0.0  ;;  %v63_v46 = vsel %vm59_vm0, %v1559_v24, 0.0  ;;  %v1797_v24 = vld [vmem:[%s2009_s2 + $0x430] sm:$0xff] }
  0x6d   :  { %346 = vmatmul.f32.vlgmr.msra.gmra.mxu3 %v250_v44  ;;  %306 = vmatmul.f32.vlgmr.msra.gmra.mxu1 %v248_v58  ;;  %v1715_v38 = vld [vmem:[%s2009_s2 + $0x460] sm:$0xff]  ;;  %v1729_v44 = vld [vmem:[%s2009_s2 + $0x458] sm:$0xff]  ;;  %v2208_v58 = vld [vmem:[#allocation43_spill] sm:$0xff] }
  0x6e   :  { %431 = vmatpush.msra.mxu0 %v1687_v36  ;;  %501 = vmatpush.msra.mxu2 %v867_v2  ;;  %v1723_v2 = vld [vmem:[%s2009_s2 + $0x498] sm:$0xff] }
  0x6f   :  { %460 = vmatpush.msra.mxu1 %v1697_v60  ;;  %520 = vmatpush.msra.mxu3 %v889_v6 }
  0x70   :  { %432 = vmatpush.msra.mxu0 %v1702_v62  ;;  %502 = vmatpush.msra.mxu2 %v879_v4  ;;  %v1737_v4 = vld [vmem:[%s2009_s2 + $0x450] sm:$0xff] }
  0x71   :  { %461 = vmatpush.msra.mxu1 %v1709_v0  ;;  %521 = vmatpush.msra.mxu3 %v896_v7  ;;  %v1749_v7 = vld [vmem:[%s2009_s2 + $0x490] sm:$0xff] }
  0x72   :  { %433 = vmatpush.msra.mxu0 %v1715_v38  ;;  %503 = vmatpush.msra.mxu2 %v902_v8  ;;  %v60_v8 = vsel %vm59_vm0, %v1553_v52, 0.0  ;;  %v2207_v52 = vld [vmem:[#allocation49_spill] sm:$0xff] }
  0x73   :  { %406 = vmatmul.f32.vlgmr.msrb.gmra.mxu2 %v253_v61  ;;  %462 = vmatpush.msra.mxu1 %v1723_v2  ;;  %v1740_v6 = vld.sshfl [vmem:[#allocation1] sm:$0xff pattern:$0x73625140]  ;;  %v1742_v48 = vld.sshfl [vmem:[#allocation1 + $0x8] sm:$0xff pattern:$0x73625140] }
  0x74   :  { %434 = vmatpush.msra.mxu0 %v1729_v44  ;;  %504 = vmatpush.msra.mxu2 %v930_v13  ;;  %475 = vst [vmem:[#allocation1] ss:$4 sm:$0xff] %v1366_v40  ;;  %v1759_v61 = vld [vmem:[%s2009_s2 + $0x448] sm:$0xff]  ;;  %v62_v40 = vadd.f32 %v61_v20, %v60_v8  ;;  %v2210_v20 = vld [vmem:[#allocation16_spill] sm:$0xff] }
  0x75   :  { %366 = vmatmul.f32.vlgmr.msrb.gmra.mxu0 %v251_v32  ;;  %426 = vmatmul.f32.vlgmr.msrb.gmra.mxu3 %v254_v50  ;;  %v1766_v13 = vld [vmem:[%s2009_s2 + $0x488] sm:$0xff]  ;;  %v1773_v32 = vld [vmem:[%s2009_s2 + $0x440] sm:$0xff]  ;;  %v65_v50 = vsel %vm59_vm0, %v1561_v34, 0.0 }
  0x76   :  { %435 = vmatpush.msra.mxu0 %v1737_v4  ;;  %505 = vmatpush.msra.mxu2 %v954_v17  ;;  %v1779_v17 = vld [vmem:[%s2009_s2 + $0x480] sm:$0xff] }
  0x77   :  { %463 = vmatpush.msra.mxu1 %v1749_v7  ;;  %522 = vmatpush.msra.mxu3 %v919_v11  ;;  %v1788_v11 = vld [vmem:[%s2009_s2 + $0x438] sm:$0xff] }
  0x78   :  { %386 = vmatmul.f32.vlgmr.msrb.gmra.mxu1 %v252_v56  ;;  %436 = vmatpush.msra.mxu0 %v1759_v61  ;;  %v2191_v34 = vld [vmem:[#allocation17_spill] sm:$0xff] }
  0x79   :  { %506 = vmatpush.msra.mxu2 %v978_v21  ;;  %464 = vmatpush.msra.mxu1 %v1766_v13  ;;  %v64_v21 = vadd.f32 %v63_v46, %v62_v40  ;;  %v2211_v40 = vld [vmem:[#allocation53_spill] sm:$0xff] }
  0x7a   :  { %437 = vmatpush.msra.mxu0 %v1773_v32  ;;  %523 = vmatpush.msra.mxu3 %v943_v15  ;;  %v1808_v15 = vld [vmem:[%s2009_s2 + $0x428] sm:$0xff] }
  0x7b   :  { %507 = vmatpush.msra.mxu2 %v1002_v25  ;;  %465 = vmatpush.msra.mxu1 %v1779_v17  ;;  %v66_v25 = vadd.f32 %v65_v50, %v64_v21  ;;  %v479_v8 = vld.sshfl [vmem:[#allocation1 + $0x8] sm:$0xff pattern:$0x73625140]  ;;  %v480_v46 = vld.sshfl [vmem:[#allocation1 + $0x10] sm:$0xff pattern:$0x73625140] }
  0x7c   :  { %438 = vmatpush.msra.mxu0 %v1788_v11  ;;  %524 = vmatpush.msra.mxu3 %v967_v19  ;;  %v1817_v19 = vld [vmem:[%s2009_s2 + $0x420] sm:$0xff]  ;;  %v1903_v21 = vld.sshfl [vmem:[#allocation1 + $0x18] sm:$0xff pattern:$0x73625140]  ;;  %v2212_v50 = vld [vmem:[#allocation47_spill] sm:$0xff] }
  0x7d   :  { %508 = vmatpush.msra.mxu2 %v1026_v29  ;;  %540 = vmatpush.msrb.mxu1 %v862_v1  ;;  %v67_v1 = vsel %vm59_vm0, %v1616_v16, 0.0  ;;  %v1837_v16 = vld [vmem:[%s2009_s2 + $0x410] sm:$0xff] }
  0x7e   :  { %439 = vmatpush.msra.mxu0 %v1797_v24  ;;  %525 = vmatpush.msra.mxu3 %v991_v23  ;;  %v68_v23 = vadd.f32 %v67_v1, %v66_v25  ;;  %v2213_v25 = vld [vmem:[#allocation27_spill] sm:$0xff]  ;;  %v2214_v1 = vld [vmem:[#allocation61_spill] sm:$0xff] }
  0x7f   :  { %509 = vmatpush.msra.mxu2 %v1050_v33  ;;  %541 = vmatpush.msrb.mxu1 %v874_v3  ;;  %v1828_v3 = vld [vmem:[%s2009_s2 + $0x418] sm:$0xff] }
  0x80   :  { %440 = vmatpush.msra.mxu0 %v1808_v15  ;;  %526 = vmatpush.msra.mxu3 %v1015_v27  ;;  %v1857_v27 = vld [vmem:[%s2009_s2 + $0x400] sm:$0xff]  ;;  %v2190_v33 = vld [vmem:[#allocation28_spill] sm:$0xff] }
  0x81   :  { %510 = vmatpush.msra.mxu2 %v1074_v37  ;;  %542 = vmatpush.msrb.mxu1 %v884_v5  ;;  %v69_v5 = vsel %vm59_vm0, %v1618_v42, 0.0  ;;  %v2194_v37 = vld [vmem:[#allocation37_spill] sm:$0xff] }
  0x82   :  { %441 = vmatpush.msra.mxu0 %v1817_v19  ;;  %527 = vmatpush.msra.mxu3 %v1039_v31  ;;  %v70_v29 = vadd.f32 %v69_v5, %v68_v23  ;;  %v73_v31 = vsel %vm59_vm0, %v1624_v12, 0.0  ;;  %v2198_v42 = vld [vmem:[#allocation41_spill] sm:$0xff]  ;;  %v2215_v23 = vld [vmem:[#allocation18_spill] sm:$0xff]  ;;  %v2216_v5 = vld [vmem:[#allocation56_spill] sm:$0xff] }
  0x83   :  { %511 = vmatpush.msra.mxu2 %v1098_v41  ;;  %543 = vmatpush.msrb.mxu1 %v907_v9  ;;  %v1848_v9 = vld [vmem:[%s2009_s2 + $0x408] sm:$0xff]  ;;  %v2197_v41 = vld [vmem:[#allocation13_spill] sm:$0xff]  ;;  %s821_s2 = smov [#allocation5]  }
  0x84   :  { %442 = vmatpush.msra.mxu0 %v1828_v3  ;;  %528 = vmatpush.msra.mxu3 %v1063_v35  ;;  %v2192_v35 = vld [vmem:[#allocation96_spill] sm:$0xff]  ;;  %s715_s21 = sshll.u32 %s821_s2, 4  ;;  %s716_s21 = int_to_ptr.vmem [resolvable:$true] %s715_s21 }
  0x85   :  { %512 = vmatpush.msra.mxu2 %v1122_v45  ;;  %544 = vmatpush.msrb.mxu1 %v935_v14  ;;  %v71_v14 = vsel %vm59_vm0, %v1622_v55, 0.0  ;;  %v75_v12 = vsel %vm59_vm0, %v2192_v35, 0.0  ;;  %v2199_v45 = vld [vmem:[#allocation35_spill] sm:$0xff]  ;;  %v2203_v55 = vld [vmem:[#allocation45_spill] sm:$0xff] }
  0x86   :  { %443 = vmatpush.msra.mxu0 %v1837_v16  ;;  %529 = vmatpush.msra.mxu3 %v1087_v39  ;;  %v2196_v39 = vld [vmem:[#allocation19_spill] sm:$0xff] }
  0x87   :  { %513 = vmatpush.msra.mxu2 %v1146_v49  ;;  %545 = vmatpush.msrb.mxu1 %v959_v18  ;;  %v72_v18 = vadd.f32 %v71_v14, %v70_v29  ;;  %v2201_v49 = vld [vmem:[#allocation97_spill] sm:$0xff]  ;;  %v2217_v29 = vld [vmem:[#allocation51_spill] sm:$0xff]  ;;  %v2218_v14 = vld [vmem:[#allocation30_spill] sm:$0xff] }
  0x88   :  { %444 = vmatpush.msra.mxu0 %v1848_v9  ;;  %530 = vmatpush.msra.mxu3 %v1111_v43  ;;  %v2225_v35 = vld [vmem:[#allocation59_spill] sm:$0xff] }
  0x89   :  { %514 = vmatpush.msra.mxu2 %v1170_v53  ;;  %546 = vmatpush.msrb.mxu1 %v983_v22  ;;  %v2189_v22 = vld [vmem:[#allocation11_spill] sm:$0xff]  ;;  %v2202_v53 = vld [vmem:[#allocation14_spill] sm:$0xff] }
  0x8a   :  { %445 = vmatpush.msra.mxu0 %v1857_v27  ;;  %531 = vmatpush.msra.mxu3 %v1135_v47  ;;  %v2200_v47 = vld [vmem:[#allocation21_spill] sm:$0xff] }
  0x8b   :  { %515 = vmatpush.msra.mxu2 %v1194_v57  ;;  %547 = vmatpush.msrb.mxu1 %v1007_v26  ;;  %v74_v26 = vadd.f32 %v73_v31, %v72_v18  ;;  %v2204_v57 = vld [vmem:[#allocation39_spill] sm:$0xff]  ;;  %v2219_v18 = vld [vmem:[#allocation20_spill] sm:$0xff]  ;;  %v2220_v31 = vld [vmem:[#allocation62_spill] sm:$0xff] }
  0x8c   :  { %446 = vmatmul.f32.vlgmr.msra.gmra.mxu0 %v1740_v6  ;;  %532 = vmatpush.msra.mxu3 %v1159_v51  ;;  %v78_v51 = vsel %vm77_vm2, %v2201_v49, 0.0  ;;  %v2209_v6 = vld [vmem:[#allocation25_spill] sm:$0xff] }
  0x8d   :  { %580 = vmatpush.msrb.mxu2 %v1207_v59  ;;  %560 = vmatpush.msrb.mxu0 %v912_v10  ;;  %v2193_v10 = vld [vmem:[#allocation12_spill] sm:$0xff]  ;;  %v76_v43 = vadd.f32 %v75_v12, %v74_v26  ;;  %v2205_v59 = vld [vmem:[#allocation23_spill] sm:$0xff]  ;;  %v2226_v12 = vld [vmem:[#allocation34_spill] sm:$0xff] }
  0x8e   :  { %548 = vmatpush.msrb.mxu1 %v1031_v30  ;;  %533 = vmatpush.msra.mxu3 %v2190_v33  ;;  %v2195_v30 = vld [vmem:[#allocation32_spill] sm:$0xff]  ;;  %v2222_v26 = vld [vmem:[#allocation31_spill] sm:$0xff]  ;;  %v2223_v33 = vld [vmem:[#allocation22_spill] sm:$0xff] }
  0x8f   :  { %581 = vmatpush.msrb.mxu2 %v1231_v63  ;;  %748 = vmatmul.msk.f32.vlgmr.msra.gmra.mxu1 %vm267_vm1, %v1742_v48  ;;  %v2206_v63 = vld [vmem:[#allocation15_spill] sm:$0xff]  ;;  %v79_v56 = vadd.f32 %v78_v51, %v76_v43  ;;  %v478_v48 = vld.sshfl [vmem:[#allocation1] sm:$0xff pattern:$0x73625140]  ;;  %v2233_v43 = vld [vmem:[#allocation68_spill] sm:$0xff] }
  0x90   :  { %561 = vmatpush.msrb.mxu0 %v2189_v22  ;;  %549 = vmatpush.msrb.mxu1 %v2191_v34  ;;  %486 = vst [vmem:[#allocation1] ss:$4 sm:$0xff] %v2214_v1  ;;  %v2221_v22 = vld [vmem:[#allocation55_spill] sm:$0xff]  ;;  %v2224_v34 = vld [vmem:[#allocation66_spill] sm:$0xff]  ;;  %v2236_v49 = vld [vmem:[#allocation77_spill] sm:$0xff] }
  0x91   :  { %582 = vmatpush.msrb.mxu2 %v2194_v37  ;;  %534 = vmatpush.msra.mxu3 %v2195_v30  ;;  %v2228_v37 = vld [vmem:[#allocation69_spill] sm:$0xff]  ;;  %v2229_v30 = vld [vmem:[#allocation64_spill] sm:$0xff] }
  0x92   :  { %562 = vmatpush.msrb.mxu0 %v2193_v10  ;;  %550 = vmatpush.msrb.mxu1 %v2196_v39  ;;  %v2227_v10 = vld [vmem:[#allocation24_spill] sm:$0xff]  ;;  %v2230_v39 = vld [vmem:[#allocation38_spill] sm:$0xff] }
  0x93   :  { %583 = vmatpush.msrb.mxu2 %v2198_v42  ;;  %535 = vmatpush.msra.mxu3 %v2199_v45  ;;  %v2232_v42 = vld [vmem:[#allocation73_spill] sm:$0xff]  ;;  %v2234_v45 = vld [vmem:[#allocation42_spill] sm:$0xff]  ;;  %v2237_v51 = vld [vmem:[#allocation72_spill] sm:$0xff] }
  0x94   :  { %563 = vmatpush.msrb.mxu0 %v2197_v41  ;;  %551 = vmatpush.msrb.mxu1 %v2200_v47  ;;  %v2231_v41 = vld [vmem:[#allocation26_spill] sm:$0xff]  ;;  %v2235_v47 = vld [vmem:[#allocation29_spill] sm:$0xff]  ;;  %v2251_v1 = vld [vmem:[#allocation44_spill] sm:$0xff] }
  0x95   :  { %584 = vmatpush.msrb.mxu2 %v2203_v55  ;;  %600 = vmatpush.msrb.mxu3 %v2204_v57  ;;  %v2239_v55 = vld [vmem:[#allocation33_spill] sm:$0xff]  ;;  %v2240_v57 = vld [vmem:[#allocation82_spill] sm:$0xff] }
  0x96   :  { %564 = vmatpush.msrb.mxu0 %v2202_v53  ;;  %552 = vmatpush.msrb.mxu1 %v2205_v59  ;;  %v2238_v53 = vld [vmem:[#allocation46_spill] sm:$0xff]  ;;  %v2241_v59 = vld [vmem:[#allocation76_spill] sm:$0xff] }
  0x97   :  { %585 = vmatpush.msrb.mxu2 %v2207_v52  ;;  %601 = vmatpush.msrb.mxu3 %v2208_v58  ;;  %v2243_v52 = vld [vmem:[#allocation36_spill] sm:$0xff] }
  0x98   :  { %565 = vmatpush.msrb.mxu0 %v2206_v63  ;;  %553 = vmatpush.msrb.mxu1 %v2209_v6  ;;  %v2242_v63 = vld [vmem:[#allocation50_spill] sm:$0xff]  ;;  %v2245_v58 = vld [vmem:[#allocation80_spill] sm:$0xff] }
  0x99   :  { %586 = vmatpush.msrb.mxu2 %v2211_v40  ;;  %602 = vmatpush.msrb.mxu3 %v2212_v50  ;;  %v2246_v6 = vld [vmem:[#allocation54_spill] sm:$0xff]  ;;  %v2248_v40 = vld [vmem:[#allocation89_spill] sm:$0xff]  ;;  %v2249_v50 = vld [vmem:[#allocation84_spill] sm:$0xff] }
  0x9a   :  { %566 = vmatpush.msrb.mxu0 %v2210_v20  ;;  %554 = vmatpush.msrb.mxu1 %v2213_v25  ;;  %v2247_v20 = vld [vmem:[#allocation40_spill] sm:$0xff]  ;;  %v2250_v25 = vld [vmem:[#allocation58_spill] sm:$0xff] }
  0x9b   :  { %80 = vadd.xlane.f32.xlu0 %v79_v56  ;;  %587 = vmatpush.msrb.mxu2 %v2216_v5  ;;  %v2244_v56 = vld [vmem:[#allocation85_spill] sm:$0xff]  ;;  %v2253_v5 = vld [vmem:[#allocation63_spill] sm:$0xff] }
  0x9c   :  { %567 = vmatpush.msrb.mxu0 %v2215_v23  ;;  %603 = vmatpush.msrb.mxu3 %v2217_v29  ;;  %v2252_v23 = vld [vmem:[#allocation88_spill] sm:$0xff] }
  0x9d   :  { %555 = vmatpush.msrb.mxu1 %v2218_v14  ;;  %588 = vmatpush.msrb.mxu2 %v2220_v31  ;;  %v2254_v29 = vld [vmem:[#allocation48_spill] sm:$0xff]  ;;  %v482_v14 = vld.sshfl [vmem:[#allocation1 + $0x20] sm:$0xff pattern:$0x73625140] }
  0x9e   :  { %568 = vmatpush.msrb.mxu0 %v2219_v18  ;;  %604 = vmatpush.msrb.mxu3 %v2221_v22  ;;  %v2256_v18 = vld [vmem:[#allocation67_spill] sm:$0xff]  ;;  %v2257_v31 = vld [vmem:[#allocation52_spill] sm:$0xff] }
  0x9f   :  { %620 = vmatpush.msra.mxu1 %v2222_v26  ;;  %589 = vmatpush.msrb.mxu2 %v2224_v34  ;;  %v483_v22 = vld.sshfl [vmem:[#allocation1 + $0x28] sm:$0xff pattern:$0x73625140]  ;;  %v2260_v26 = vld [vmem:[#allocation57_spill] sm:$0xff]  ;;  %v2263_v34 = vld [vmem:[#allocation60_spill] sm:$0xff] }
  0xa0   :  { %569 = vmatpush.msrb.mxu0 %v2223_v33  ;;  %605 = vmatpush.msrb.mxu3 %v2225_v35  ;;  %v2262_v33 = vld [vmem:[#allocation74_spill] sm:$0xff]  ;;  %v2265_v35 = vld [vmem:[#allocation65_spill] sm:$0xff] }
  0xa1   :  { %621 = vmatpush.msra.mxu1 %v2226_v12  ;;  %590 = vmatpush.msrb.mxu2 %v2228_v37  ;;  %v2266_v12 = vld [vmem:[#allocation83_spill] sm:$0xff] }
  0xa2   :  { %570 = vmatpush.msrb.mxu0 %v2227_v10  ;;  %606 = vmatpush.msrb.mxu3 %v2229_v30  ;;  %v484_v10 = vld.sshfl [vmem:[#allocation1 + $0x30] sm:$0xff pattern:$0x73625140] }
  0xa3   :  { %622 = vmatpush.msra.mxu1 %v2230_v39  ;;  %591 = vmatpush.msrb.mxu2 %v2232_v42 }
  0xa4   :  { %571 = vmatpush.msrb.mxu0 %v2231_v41  ;;  %607 = vmatpush.msrb.mxu3 %v2233_v43 }
  0xa5   :  { %623 = vmatpush.msra.mxu1 %v2234_v45  ;;  %592 = vmatpush.msrb.mxu2 %v2236_v49 }
  0xa6   :  { %572 = vmatpush.msrb.mxu0 %v2235_v47  ;;  %608 = vmatpush.msrb.mxu3 %v2237_v51 }
  0xa7   :  { %624 = vmatpush.msra.mxu1 %v2238_v53  ;;  %593 = vmatpush.msrb.mxu2 %v2240_v57 }
  0xa8   :  { %573 = vmatpush.msrb.mxu0 %v2239_v55  ;;  %609 = vmatpush.msrb.mxu3 %v2241_v59 }
  0xa9   :  { %625 = vmatpush.msra.mxu1 %v2242_v63  ;;  %594 = vmatpush.msrb.mxu2 %v2244_v56 }
  0xaa   :  { %574 = vmatpush.msrb.mxu0 %v2243_v52  ;;  %610 = vmatpush.msrb.mxu3 %v2245_v58 }
  0xab   :  { %626 = vmatpush.msra.mxu1 %v2246_v6  ;;  %516 = vmatmul.f32.vlgmr.msra.gmra.mxu2 %v478_v48  ;;  %v2255_v48 = vld [vmem:[#allocation92_spill] sm:$0xff] }
  0xac   :  { %575 = vmatpush.msrb.mxu0 %v2247_v20  ;;  %595 = vmatpush.msrb.mxu2 %v2248_v40 }
  0xad   :  { %611 = vmatpush.msrb.mxu3 %v2249_v50  ;;  %627 = vmatpush.msra.mxu1 %v2250_v25 }
  0xae   :  { %536 = vmatmul.f32.vlgmr.msra.gmra.mxu3 %v479_v8  ;;  %640 = vmatpush.msra.mxu0 %v2251_v1  ;;  %v2258_v8 = vld [vmem:[#allocation94_spill] sm:$0xff] }
  0xaf   :  { %660 = vmatpush.msra.mxu2 %v1682_v54  ;;  %612 = vmatpush.msrb.mxu3 %v2252_v23  ;;  %v2259_v54 = vld [vmem:[#allocation71_spill] sm:$0xff] }
  0xb0   :  { %628 = vmatpush.msra.mxu1 %v2253_v5  ;;  %641 = vmatpush.msra.mxu0 %v2254_v29 }
  0xb1   :  { %661 = vmatpush.msra.mxu2 %v1687_v36  ;;  %613 = vmatpush.msrb.mxu3 %v2255_v48  ;;  %v2261_v36 = vld [vmem:[#allocation98_spill] sm:$0xff] }
  0xb2   :  { %629 = vmatpush.msra.mxu1 %v2256_v18  ;;  %642 = vmatpush.msra.mxu0 %v2257_v31 }
  0xb3   :  { %662 = vmatpush.msra.mxu2 %v1702_v62  ;;  %614 = vmatpush.msrb.mxu3 %v2258_v8  ;;  %v2264_v62 = vld [vmem:[#allocation78_spill] sm:$0xff] }
  0xb4   :  { %630 = vmatpush.msra.mxu1 %v2259_v54  ;;  %596 = vmatmul.f32.vlgmr.msrb.gmra.mxu2 %v482_v14 }
  0xb5   :  { %643 = vmatpush.msra.mxu0 %v2260_v26  ;;  %663 = vmatpush.msra.mxu2 %v1715_v38  ;;  %v2267_v38 = vld [vmem:[#allocation70_spill] sm:$0xff] }
  0xb6   :  { %615 = vmatpush.msrb.mxu3 %v2261_v36  ;;  %631 = vmatpush.msra.mxu1 %v2262_v33 }
  0xb7   :  { %556 = vmatmul.f32.vlgmr.msrb.gmra.mxu1 %v480_v46  ;;  %616 = vmatmul.f32.vlgmr.msrb.gmra.mxu3 %v483_v22  ;;  %v2268_v46 = vld [vmem:[#allocation86_spill] sm:$0xff] }
  0xb8   :  { %644 = vmatpush.msra.mxu0 %v2263_v34  ;;  %664 = vmatpush.msra.mxu2 %v1729_v44  ;;  %v2269_v44 = vld [vmem:[#allocation75_spill] sm:$0xff] }
  0xb9   :  { %632 = vmatpush.msra.mxu1 %v2264_v62  ;;  %576 = vmatmul.f32.vlgmr.msrb.gmra.mxu0 %v1903_v21  ;;  %v2270_v21 = vld [vmem:[#allocation90_spill] sm:$0xff] }
  0xba   :  { %645 = vmatpush.msra.mxu0 %v2265_v35  ;;  %665 = vmatpush.msra.mxu2 %v1737_v4  ;;  %v2271_v4 = vld [vmem:[#allocation79_spill] sm:$0xff] }
  0xbb   :  { %633 = vmatpush.msra.mxu1 %v2266_v12  ;;  %690 = vmatpush.msra.mxu3 %v1697_v60  ;;  %v2272_v60 = vld [vmem:[#allocation81_spill] sm:$0xff] }
  0xbc   :  { %646 = vmatpush.msra.mxu0 %v2267_v38  ;;  %666 = vmatpush.msra.mxu2 %v1759_v61  ;;  %v2273_v61 = vld [vmem:[#allocation87_spill] sm:$0xff] }
  0xbd   :  { %634 = vmatpush.msra.mxu1 %v2268_v46  ;;  %691 = vmatpush.msra.mxu3 %v1709_v0  ;;  %v488_v0 = vld.sshfl [vmem:[#allocation1 + $0x8] sm:$0xff pattern:$0x73625140] }
  0xbe   :  { %647 = vmatpush.msra.mxu0 %v2269_v44  ;;  %667 = vmatpush.msra.mxu2 %v1773_v32  ;;  %v2276_v32 = vld [vmem:[#allocation95_spill] sm:$0xff] }
  0xbf   :  { %635 = vmatpush.msra.mxu1 %v2270_v21  ;;  %692 = vmatpush.msra.mxu3 %v1723_v2  ;;  %v2274_v2 = vld [vmem:[#allocation91_spill] sm:$0xff] }
  0xc0   :  { %636 = vmatmul.f32.vlgmr.msra.gmra.mxu1 %v484_v10  ;;  %648 = vmatpush.msra.mxu0 %v2271_v4 }
  0xc1   :  { %668 = vmatpush.msra.mxu2 %v1788_v11  ;;  %693 = vmatpush.msra.mxu3 %v1749_v7  ;;  %v2275_v7 = vld [vmem:[#allocation93_spill] sm:$0xff] }
  0xc2   :  { %649 = vmatpush.msra.mxu0 %v2272_v60  ;;  %v485_v11 = vld.sshfl [vmem:[#allocation1 + $0x38] sm:$0xff pattern:$0x73625140] }
  0xc3   :  { %669 = vmatpush.msra.mxu2 %v1797_v24  ;;  %694 = vmatpush.msra.mxu3 %v1766_v13  ;;  %v2277_v13 = vld [vmem:[#allocation99_spill] sm:$0xff] }
  0xc4   :  { %650 = vmatpush.msra.mxu0 %v2273_v61 }
  0xc5   :  { %670 = vmatpush.msra.mxu2 %v1808_v15  ;;  %695 = vmatpush.msra.mxu3 %v1779_v17  ;;  %v487_v17 = vld.sshfl [vmem:[#allocation1] sm:$0xff pattern:$0x73625140] }
  0xc6   :  { %651 = vmatpush.msra.mxu0 %v2274_v2  ;;  %749 = vmatmul.msk.f32.vlgmr.msra.gmra.mxu3 %vm267_vm1, %v488_v0 }
  0xc7   :  { %671 = vmatpush.msra.mxu2 %v1817_v19 }
  0xc8   :  { %652 = vmatpush.msra.mxu0 %v2275_v7 }
  0xc9   :  { %672 = vmatpush.msra.mxu2 %v1828_v3 }
  0xca   :  { %653 = vmatpush.msra.mxu0 %v2276_v32 }
  0xcb   :  { %673 = vmatpush.msra.mxu2 %v1837_v16 }
  0xcc   :  { %654 = vmatpush.msra.mxu0 %v2277_v13 }
  0xcd   :  { %674 = vmatpush.msra.mxu2 %v1848_v9 }
  0xce   :  { %655 = vmatpush.msra.mxu0 %v1675_v28 }
  0xcf   :  { %675 = vmatpush.msra.mxu2 %v1857_v27  ;;  %656 = vmatmul.f32.vlgmr.msra.gmra.mxu0 %v485_v11 }
  0xd0   :  { %676 = vmatmul.f32.vlgmr.msra.gmra.mxu2 %v487_v17 }
  0xe8   :  { %v287_v15 = vpop.f32.mrf.mxu0 }
  0xea   :  { %v307_v24 = vpop.f32.mrf.mxu1 }
  0xeb   :  { %v308_v19 = vadd.f32 %v307_v24, %v287_v15 }
  0xee   :  { %v327_v3 = vpop.f32.mrf.mxu2 }
  0xef   :  { %v328_v37 = vadd.f32 %v327_v3, %v308_v19 }
  0xf0   :  { %v347_v30 = vpop.f32.mrf.mxu3 }
  0xf1   :  { %v348_v39 = vadd.f32 %v347_v30, %v328_v37 }
  0xf2   :  { %v367_v16 = vpop.f32.mrf.mxu0 }
  0xf3   :  { %v368_v41 = vadd.f32 %v367_v16, %v348_v39 }
  0xf5   :  { %v387_v42 = vpop.f32.mrf.mxu1 }
  0xf6   :  { %v388_v43 = vadd.f32 %v387_v42, %v368_v41  ;;  %v407_v45 = vpop.f32.mrf.mxu2 }
  0xf8   :  { %v408_v9 = vadd.f32 %v407_v45, %v388_v43  ;;  %v427_v47 = vpop.f32.mrf.mxu3 }
  0xfa   :  { %v428_v49 = vadd.f32 %v427_v47, %v408_v9 }
 0x109   :  { %v447_v28 = vpop.f32.mrf.mxu0 }
 0x10a   :  { %v448_v51 = vadd.f32 %v447_v28, %v428_v49 }
 0x10c   :  { %v467_v27 = vpop.f32.mrf.mxu1 }
 0x10d   :  { %v468_v53 = vadd.f32 %v467_v27, %v448_v51 }
 0x10e   :  { %v81_v55 = vpop.xlane.xlu0 %80 }
 0x10f   :  { %v82_v57 = vrot.slane %v81_v55, 4  ;;  %471 = vst.msk [vmem:[#allocation5] sm:$0x3] %vm470_vm3, %v468_v53 }
 0x110   :  { %720 = dma.vmem_to_hbm [thread:$0]  %s716_s21, 32, %s718_s23, [#allocation3]  }
 0x111   :  { %v83_v59 = vadd.f32 %v82_v57, %v81_v55 }
 0x113   :  { %v84_v63 = vrot.slane %v83_v59, 2 }
 0x115   :  { %v85_v52 = vadd.f32 %v84_v63, %v83_v59 }
 0x117   :  { %v86_v56 = vrot.slane %v85_v52, 1 }
 0x119   :  { %v87_v58 = vadd.f32 %v86_v56, %v85_v52 }
 0x11b   :  { %750 = vpush %v87_v58 }
 0x12e   :  { %v517_v20 = vpop.f32.mrf.mxu2 }
 0x131   :  { %v537_v6 = vpop.f32.mrf.mxu3 }
 0x132   :  { %v538_v40 = vadd.f32 %v537_v6, %v517_v20 }
 0x134   :  { %v557_v50 = vpop.f32.mrf.mxu1 }
 0x135   :  { %v558_v25 = vadd.f32 %v557_v50, %v538_v40 }
 0x136   :  { %v577_v1 = vpop.f32.mrf.mxu0 }
 0x137   :  { %v578_v23 = vadd.f32 %v577_v1, %v558_v25  ;;  %v597_v5 = vpop.f32.mrf.mxu2 }
 0x139   :  { %v598_v29 = vadd.f32 %v597_v5, %v578_v23 }
 0x13a   :  { %v617_v48 = vpop.f32.mrf.mxu3 }
 0x13b   :  { %v618_v14 = vadd.f32 %v617_v48, %v598_v29 }
 0x13d   :  { %v637_v18 = vpop.f32.mrf.mxu1 }
 0x13e   :  { %v638_v8 = vadd.f32 %v637_v18, %v618_v14 }
 0x149   :  { %v697_v26 = vpop.f32.mrf.mxu3 }
 0x14c   :  { %s751_s26 = spop %750  ;;  %v657_v31 = vpop.f32.mrf.mxu0 }
 0x14d   :  { %90 = sst [smem:[#allocation2]] %s751_s26  ;;  %v658_v54 = vadd.f32 %v657_v31, %v638_v8 }
 0x14e   :  { %709 = dma.smem_to_hbm %s822_s27, 16, %s707_s25, [#allocation4]  }
 0x153   :  { %v677_v22 = vpop.f32.mrf.mxu2 }
 0x154   :  { %v678_v36 = vadd.f32 %v677_v22, %v658_v54 }
 0x156   :  { %v698_v33 = vadd.f32 %v697_v26, %v678_v36 }
 0x158   :  { %700 = vst.msk [vmem:[#allocation6] sm:$0x3] %vm470_vm3, %v698_v33 }
 0x159   :  { %731 = dma.vmem_to_hbm [thread:$0]  %s727_s29, 32, %s729_s7, [#allocation7]  }
 0x15a   :  { %815 = dma.done.wait [#allocation4], 16  }
 0x15b   :  { %816 = vsyncadd [#allocation4], 4294967280 }
 0x15c   :  { %817 = dma.done.wait [#allocation3], 32  }
 0x15d   :  { %818 = vsyncadd [#allocation3], 4294967264 }
 0x15e   :  { %819 = dma.done.wait [#allocation7], 32  }
 0x15f   :  { %820 = vsyncadd [#allocation7], 4294967264 }
 0x160   :  { %744 = sfence }
 0x161   :  { %745 = vsyncpa [#allocation3], 1 }
 0x162   :  { %746 = vsyncpa [#allocation7], 1 }
 0x163   :  { %747 = vsyncpa [#allocation4], 1 }

</bundles_post_ra>
